<compile_context>
chip_gen: v7x
topology: tpu7x:2x2x1
jax: 0.10.0
libtpu: 0.0.40
codegen_flags: <defaults>
</compile_context>

<pallas_src>
import functools

import jax
import jax.numpy as jnp
from jax import lax
from jax.experimental import pallas as pl
from jax.experimental.pallas import tpu as pltpu


# ---------------------------------------------------------------------------
# Kernel: sigmoid focal loss (elementwise sum) + per-batch cardinality count.
# Grid: (B, cdiv(Q, tq)); batch axis is parallel (megacore), query axis is the
# in-kernel accumulator axis ("arbitrary").
# ---------------------------------------------------------------------------
def _focal_card_kernel(logits_ref, tgt_ref, loss_ref, card_ref, acc_ref, cnt_ref,
                       *, alpha, q_total):
    qi = pl.program_id(1)
    n_q = pl.num_programs(1)

    @pl.when(qi == 0)
    def _init():
        acc_ref[...] = jnp.zeros_like(acc_ref)
        cnt_ref[...] = jnp.zeros_like(cnt_ref)

    x = logits_ref[...].astype(jnp.float32)          # (1, tq, C), upcast in-register
    tgt = tgt_ref[...]                               # (1, tq, 1) int32
    tq = x.shape[1]
    C = x.shape[2]

    # One-hot as a bool mask only; "no-object" queries carry class id == C -> all-False row
    # (matches the reference's (C+1)-wide one-hot with the last column dropped).
    cls_iota = lax.broadcasted_iota(jnp.int32, (1, 1, C), 2)     # broadcast by the compare
    t_mask = cls_iota == tgt                                     # (1, tq, C) bool

    # Row-validity mask for the cdiv-padded tail tile (padded queries contribute nothing).
    row_iota = lax.broadcasted_iota(jnp.int32, (1, tq, 1), 1)
    valid = (qi * tq + row_iota) < q_total                       # (1, tq, 1) bool

    # Numerically stable sigmoid focal loss (gamma == 2), 2 transcendentals + 1 EUP recip
    # per element, boolean selects instead of float one-hot arithmetic:
    #   ce       = max(x,0) - x*t + log(1+e)   ==  where(t == (x>=0), 0, |x|) + log(1+e)
    #   1 - p_t  = where(t, 1-sigmoid, sigmoid) ==  inv * where(t == (x>=0), e, 1)
    ax = jnp.abs(x)
    e = jnp.exp(-ax)
    log1pe = jnp.log(1.0 + e)
    inv = pl.reciprocal(1.0 + e, approx=True)                    # EUP slot, ~free
    ge = x >= 0.0
    same = t_mask == ge
    ce = jnp.where(same, 0.0, ax) + log1pe
    omp = inv * jnp.where(same, e, 1.0)                          # (1 - p_t)
    alpha_t = jnp.where(t_mask, jnp.float32(alpha), jnp.float32(1.0 - alpha))
    loss = alpha_t * ce * (omp * omp)
    loss = jnp.where(valid, loss, 0.0)

    # Purely elementwise accumulation into a wide VMEM scratch (no per-step reduction).
    acc_ref[...] += loss

    # Cardinality: first-occurrence argmax != C-1  <=>  max(x[..., :C-1]) >= x[..., C-1].
    # Masked selects reuse cls_iota (no non-tile-aligned lane slices).
    fmin = jnp.float32(jnp.finfo(jnp.float32).min)
    fg_max = jnp.max(jnp.where(cls_iota < (C - 1), x, fmin), axis=-1, keepdims=True)
    last_v = jnp.max(jnp.where(cls_iota == (C - 1), x, fmin), axis=-1, keepdims=True)
    is_obj = jnp.logical_and(fg_max >= last_v, valid)            # (1, tq, 1)
    cnt_ref[...] += is_obj.astype(jnp.float32)

    # Single cross-lane reduce + scalar store, once per batch element.
    @pl.when(qi == n_q - 1)
    def _finalize():
        loss_ref[...] = jnp.sum(acc_ref[...], keepdims=True)
        card_ref[...] = jnp.sum(cnt_ref[...], keepdims=True)


def _default_q_tile(Q, max_tile=256):
    """Query tile: multiple of 8, capped at max_tile (grid uses cdiv, no divisibility needed)."""
    return min(max_tile, ((Q + 7) // 8) * 8)


def focal_and_cardinality(logits, target_classes, *, alpha, q_tile=None):
    B, Q, C = logits.shape
    tq = q_tile if q_tile is not None else _default_q_tile(Q)
    tq = max(8, ((tq + 7) // 8) * 8)
    tq = min(tq, ((Q + 7) // 8) * 8)
    n_q = pl.cdiv(Q, tq)

    tgt3 = target_classes.reshape(B, Q, 1).astype(jnp.int32)
    kernel = functools.partial(_focal_card_kernel, alpha=float(alpha), q_total=Q)

    # Explicit VMEM budget: double-buffered (lane-padded) input blocks + scratch + headroom.
    lane = 128
    c_pad = ((C + lane - 1) // lane) * lane
    in_bytes = 2 * (tq * c_pad * logits.dtype.itemsize + tq * lane * 4)   # 2x = pipeline buffers
    scratch_bytes = tq * c_pad * 4 + tq * lane * 4
    vmem_budget = int(min(32 << 20, max(8 << 20, 4 * (in_bytes + scratch_bytes))))

    # Advisory cost hint so XLA overlaps this few-microsecond kernel with surrounding ops.
    cost = pl.CostEstimate(
        flops=15 * B * Q * C,
        transcendentals=3 * B * Q * C,
        bytes_accessed=logits.size * logits.dtype.itemsize + tgt3.size * 4 + 2 * B * 4,
    )

    loss_p, card_p = pl.pallas_call(
        kernel,
        grid=(B, n_q),
        out_shape=(
            jax.ShapeDtypeStruct((B, 1, 1), jnp.float32),   # per-batch focal-loss partial sums
            jax.ShapeDtypeStruct((B, 1, 1), jnp.float32),   # per-batch cardinality counts
        ),
        in_specs=[
            pl.BlockSpec((1, tq, C), lambda b, q: (b, q, 0)),
            pl.BlockSpec((1, tq, 1), lambda b, q: (b, q, 0)),
        ],
        out_specs=(
            pl.BlockSpec((1, 1, 1), lambda b, q: (b, 0, 0)),
            pl.BlockSpec((1, 1, 1), lambda b, q: (b, 0, 0)),
        ),
        scratch_shapes=[
            pltpu.VMEM((1, tq, C), jnp.float32),   # wide focal-loss accumulator
            pltpu.VMEM((1, tq, 1), jnp.float32),   # per-query object-count accumulator
        ],
        compiler_params=pltpu.CompilerParams(
            dimension_semantics=("parallel", "arbitrary"),
            vmem_limit_bytes=vmem_budget,
        ),
        cost_estimate=cost,
    )(logits, tgt3)

    return loss_p[:, 0, 0], card_p[:, 0, 0]


# ---------------------------------------------------------------------------
# SetCriterion.forward (losses = ['labels', 'cardinality', 'boxes'])
# ---------------------------------------------------------------------------
def set_criterion_forward(outputs, targets, *, num_classes, focal_alpha=0.25, q_tile=None):
    pred_logits = outputs["pred_logits"]      # (B, Q, C), native dtype (f32 or bf16)
    pred_boxes = outputs["pred_boxes"]        # (B, Q, 5)
    B, Q, C = pred_logits.shape
    assert C == num_classes

    # --- matcher: deterministic identity assignment (see TODO at top) ---
    indices = []
    for t in targets:
        n = t["labels"].shape[0]
        idx = jnp.arange(n, dtype=jnp.int32)
        indices.append((idx, idx))

    total_tgts = sum(int(t["labels"].shape[0]) for t in targets)
    num_boxes = max(float(total_tgts), 1.0)

    # _get_src_permutation_idx
    batch_idx = jnp.concatenate(
        [jnp.full_like(src, i) for i, (src, _) in enumerate(indices)]
    )
    src_idx = jnp.concatenate([src for src, _ in indices])
    target_classes_o = jnp.concatenate(
        [t["labels"][J] for t, (_, J) in zip(targets, indices)]
    ).astype(jnp.int32)

    # ---------------- loss_labels (Pallas hot path) ----------------
    target_classes = jnp.full((B, Q), num_classes, dtype=jnp.int32)
    target_classes = target_classes.at[batch_idx, src_idx].set(target_classes_o)

    loss_partials, card_counts = focal_and_cardinality(
        pred_logits, target_classes, alpha=focal_alpha, q_tile=q_tile
    )
    # sigmoid_focal_loss(...).mean(1).sum() / num_boxes * Q == full elementwise sum / num_boxes
    loss_ce = jnp.sum(loss_partials) / num_boxes

    # class_error = 100 - top1 accuracy on matched predictions (tiny gather, plain JAX)
    matched_logits = pred_logits[batch_idx, src_idx].astype(jnp.float32)   # (N, C)
    pred_cls = jnp.argmax(matched_logits, axis=-1)
    acc = jnp.mean((pred_cls == target_classes_o).astype(jnp.float32)) * 100.0
    class_error = 100.0 - acc

    # ---------------- loss_cardinality ----------------
    tgt_lengths = jnp.asarray(
        [t["labels"].shape[0] for t in targets], dtype=jnp.float32
    )
    cardinality_error = jnp.mean(jnp.abs(card_counts - tgt_lengths))

    # ---------------- loss_boxes ----------------
    # (N, 5) is far below one vreg tile: plain JAX, fused by XLA with the gather.
    src_boxes = pred_boxes[batch_idx, src_idx].astype(jnp.float32)          # (N, 5)
    target_boxes = jnp.concatenate(
        [t["boxes"][i] for t, (_, i) in zip(targets, indices)], axis=0
    ).astype(jnp.float32)
    d = jnp.abs(src_boxes - target_boxes)
    smooth_l1 = jnp.where(d < 1.0, 0.5 * d * d, d - 0.5)
    loss_bbox = jnp.sum(smooth_l1) / num_boxes   # TODO(synk): add KFLoss term (source unavailable)

    return {
        "loss_ce": loss_ce,
        "class_error": class_error,
        "cardinality_error": cardinality_error,
        "loss_bbox": loss_bbox,
    }


if __name__ == "__main__":
    key = jax.random.PRNGKey(0)
    # Q deliberately NOT a multiple of the tile so the masked cdiv tail path is exercised.
    B, Q, C = 2, 20, 8   # batch, num_queries, num_classes
    k1, k2, k3, k4, k5, k6 = jax.random.split(key, 6)

    pred_logits = jax.random.normal(k1, (B, Q, C), dtype=jnp.float32)
    pred_boxes = jax.nn.sigmoid(jax.random.normal(k2, (B, Q, 5), dtype=jnp.float32))

    targets = [
        {
            "labels": jax.random.randint(k3, (3,), 0, C, dtype=jnp.int32),
            "boxes": jax.random.uniform(k4, (3, 5), dtype=jnp.float32),
        },
        {
            "labels": jax.random.randint(k5, (2,), 0, C, dtype=jnp.int32),
            "boxes": jax.random.uniform(k6, (2, 5), dtype=jnp.float32),
        },
    ]

    losses = set_criterion_forward(
        {"pred_logits": pred_logits, "pred_boxes": pred_boxes},
        targets,
        num_classes=C,
        focal_alpha=0.25,
        q_tile=8,   # cdiv(20, 8) = 3 grid steps -> exercises accumulator + tail-mask paths
    )
    jax.block_until_ready(losses)
    print("KERNEL_OK")
</pallas_src>

<mosaic_0001>
module attributes {stable_mosaic.version = 11 : i64} {
  func.func @_focal_card_kernel(%arg0: i32, %arg1: i32, %arg2: memref<1x8x8xf32, #tpu.memory_space<vmem>>, %arg3: memref<1x8x1xi32, #tpu.memory_space<vmem>>, %arg4: memref<1x1x1xf32, #tpu.memory_space<vmem>>, %arg5: memref<1x1x1xf32, #tpu.memory_space<vmem>>, %arg6: memref<1x8x8xf32, #tpu.memory_space<vmem>>, %arg7: memref<1x8x1xf32, #tpu.memory_space<vmem>>) attributes {dimension_semantics = [#tpu.dimension_semantics<parallel>, #tpu.dimension_semantics<arbitrary>], iteration_bounds = array<i64: 2, 3>, scalar_prefetch = 0 : i64, scratch_operands = 2 : i64, tpu.core_type = #tpu.core_type<tc>, window_params = [{transform_indices = @transform_0, window_bounds = array<i64: 1, 8, 8>}, {transform_indices = @transform_1, window_bounds = array<i64: 1, 8, 1>}, {transform_indices = @transform_2, window_bounds = array<i64: 1, 1, 1>}, {transform_indices = @transform_3, window_bounds = array<i64: 1, 1, 1>}]} {
    %c0_i32 = arith.constant 0 : i32
    %0 = arith.cmpi eq, %arg1, %c0_i32 : i32
    %1 = arith.extui %0 : i1 to i32
    %c0_i32_0 = arith.constant 0 : i32
    %2 = arith.cmpi ne, %1, %c0_i32_0 : i32
    scf.if %2 {
      %cst_33 = arith.constant 0.000000e+00 : f32
      %74 = vector.broadcast %cst_33 : f32 to vector<1x8x8xf32>
      %c0_34 = arith.constant 0 : index
      %c0_35 = arith.constant 0 : index
      %c0_36 = arith.constant 0 : index
      %75 = vector.load %arg6[%c0_34, %c0_35, %c0_36] : memref<1x8x8xf32, #tpu.memory_space<vmem>>, vector<1x8x8xf32>
      tpu.vector_store %arg6[%c0_34, %c0_35, %c0_36], %74 {strides = array<i32>} : memref<1x8x8xf32, #tpu.memory_space<vmem>>, vector<1x8x8xf32>,
      %cst_37 = arith.constant 0.000000e+00 : f32
      %76 = vector.broadcast %cst_37 : f32 to vector<1x8x1xf32>
      %c0_38 = arith.constant 0 : index
      %c0_39 = arith.constant 0 : index
      %c0_40 = arith.constant 0 : index
      %77 = vector.load %arg7[%c0_38, %c0_39, %c0_40] : memref<1x8x1xf32, #tpu.memory_space<vmem>>, vector<1x8x1xf32>
      tpu.vector_store %arg7[%c0_38, %c0_39, %c0_40], %76 {strides = array<i32>} : memref<1x8x1xf32, #tpu.memory_space<vmem>>, vector<1x8x1xf32>,
    } else {
    }
    %c0 = arith.constant 0 : index
    %c0_1 = arith.constant 0 : index
    %c0_2 = arith.constant 0 : index
    %3 = vector.load %arg2[%c0, %c0_1, %c0_2] : memref<1x8x8xf32, #tpu.memory_space<vmem>>, vector<1x8x8xf32>
    %c0_3 = arith.constant 0 : index
    %c0_4 = arith.constant 0 : index
    %c0_5 = arith.constant 0 : index
    %4 = vector.load %arg3[%c0_3, %c0_4, %c0_5] : memref<1x8x1xi32, #tpu.memory_space<vmem>>, vector<1x8x1xi32>
    %5 = tpu.iota {dimensions = array<i32: 2>} : vector<1x1x8xi32>
    %6 = vector.broadcast %5 : vector<1x1x8xi32> to vector<1x8x8xi32>
    %7 = vector.broadcast %4 : vector<1x8x1xi32> to vector<1x8x8xi32>
    %8 = arith.cmpi eq, %6, %7 : vector<1x8x8xi32>
    %9 = tpu.iota {dimensions = array<i32: 1>} : vector<1x8x1xi32>
    %c8_i32 = arith.constant 8 : i32
    %10 = arith.muli %arg1, %c8_i32 : i32
    %11 = vector.broadcast %10 : i32 to vector<1x8x1xi32>
    %12 = arith.addi %11, %9 : vector<1x8x1xi32>
    %c20_i32 = arith.constant 20 : i32
    %13 = vector.broadcast %c20_i32 : i32 to vector<1x8x1xi32>
    %14 = arith.cmpi slt, %12, %13 : vector<1x8x1xi32>
    %15 = math.absf %3 : vector<1x8x8xf32>
    %cst = arith.constant 0.000000e+00 : f32
    %16 = vector.broadcast %cst : f32 to vector<1x8x8xf32>
    %17 = arith.subf %16, %15 : vector<1x8x8xf32>
    %18 = math.exp %17 : vector<1x8x8xf32>
    %cst_6 = arith.constant 1.000000e+00 : f32
    %19 = vector.broadcast %cst_6 : f32 to vector<1x8x8xf32>
    %20 = arith.addf %19, %18 : vector<1x8x8xf32>
    %21 = math.log %20 : vector<1x8x8xf32>
    %cst_7 = arith.constant 1.000000e+00 : f32
    %22 = vector.broadcast %cst_7 : f32 to vector<1x8x8xf32>
    %23 = arith.addf %22, %18 : vector<1x8x8xf32>
    %24 = tpu.reciprocal %23 {approx = true} : vector<1x8x8xf32> -> vector<1x8x8xf32>
    %cst_8 = arith.constant 0.000000e+00 : f32
    %25 = vector.broadcast %cst_8 : f32 to vector<1x8x8xf32>
    %26 = arith.cmpf oge, %3, %25 : vector<1x8x8xf32>
    %27 = arith.xori %8, %26 : vector<1x8x8xi1>
    %cst_9 = arith.constant dense<true> : vector<1x8x8xi1>
    %28 = arith.xori %27, %cst_9 : vector<1x8x8xi1>
    %cst_10 = arith.constant 0.000000e+00 : f32
    %29 = vector.broadcast %cst_10 : f32 to vector<1x8x8xf32>
    %30 = arith.select %28, %29, %15 : vector<1x8x8xi1>, vector<1x8x8xf32>
    %31 = arith.addf %30, %21 : vector<1x8x8xf32>
    %cst_11 = arith.constant 1.000000e+00 : f32
    %32 = vector.broadcast %cst_11 : f32 to vector<1x8x8xf32>
    %33 = arith.select %28, %18, %32 : vector<1x8x8xi1>, vector<1x8x8xf32>
    %34 = arith.mulf %24, %33 : vector<1x8x8xf32>
    %cst_12 = arith.constant 2.500000e-01 : f32
    %cst_13 = arith.constant 7.500000e-01 : f32
    %35 = vector.broadcast %cst_12 : f32 to vector<1x8x8xf32>
    %36 = vector.broadcast %cst_13 : f32 to vector<1x8x8xf32>
    %37 = arith.select %8, %35, %36 : vector<1x8x8xi1>, vector<1x8x8xf32>
    %38 = arith.mulf %37, %31 : vector<1x8x8xf32>
    %39 = arith.mulf %34, %34 : vector<1x8x8xf32>
    %40 = arith.mulf %38, %39 : vector<1x8x8xf32>
    %cst_14 = arith.constant 0.000000e+00 : f32
    %41 = vector.shape_cast %14 : vector<1x8x1xi1> to vector<1x8x1xi1>
    %42 = vector.broadcast %41 : vector<1x8x1xi1> to vector<1x8x8xi1>
    %43 = vector.broadcast %cst_14 : f32 to vector<1x8x8xf32>
    %44 = arith.select %42, %40, %43 : vector<1x8x8xi1>, vector<1x8x8xf32>
    %c0_15 = arith.constant 0 : index
    %c0_16 = arith.constant 0 : index
    %c0_17 = arith.constant 0 : index
    %45 = vector.load %arg6[%c0_15, %c0_16, %c0_17] : memref<1x8x8xf32, #tpu.memory_space<vmem>>, vector<1x8x8xf32>
    %46 = arith.addf %45, %44 : vector<1x8x8xf32>
    %c0_18 = arith.constant 0 : index
    %c0_19 = arith.constant 0 : index
    %c0_20 = arith.constant 0 : index
    %47 = vector.load %arg6[%c0_18, %c0_19, %c0_20] : memref<1x8x8xf32, #tpu.memory_space<vmem>>, vector<1x8x8xf32>
    tpu.vector_store %arg6[%c0_18, %c0_19, %c0_20], %46 {strides = array<i32>} : memref<1x8x8xf32, #tpu.memory_space<vmem>>, vector<1x8x8xf32>,
    %c7_i32 = arith.constant 7 : i32
    %48 = vector.broadcast %c7_i32 : i32 to vector<1x1x8xi32>
    %49 = arith.cmpi slt, %5, %48 : vector<1x1x8xi32>
    %cst_21 = arith.constant -3.40282347E+38 : f32
    %50 = vector.shape_cast %49 : vector<1x1x8xi1> to vector<1x1x8xi1>
    %51 = vector.broadcast %50 : vector<1x1x8xi1> to vector<1x8x8xi1>
    %52 = vector.broadcast %cst_21 : f32 to vector<1x8x8xf32>
    %53 = arith.select %51, %3, %52 : vector<1x8x8xi1>, vector<1x8x8xf32>
    %cst_22 = arith.constant dense<0xFF800000> : vector<1x8xf32>
    %54 = vector.multi_reduction <maximumf>, %53, %cst_22 [2] : vector<1x8x8xf32> to vector<1x8xf32>
    %55 = vector.shape_cast %54 : vector<1x8xf32> to vector<1x8x1xf32>
    %c7_i32_23 = arith.constant 7 : i32
    %56 = vector.broadcast %c7_i32_23 : i32 to vector<1x1x8xi32>
    %57 = arith.cmpi eq, %5, %56 : vector<1x1x8xi32>
    %cst_24 = arith.constant -3.40282347E+38 : f32
    %58 = vector.shape_cast %57 : vector<1x1x8xi1> to vector<1x1x8xi1>
    %59 = vector.broadcast %58 : vector<1x1x8xi1> to vector<1x8x8xi1>
    %60 = vector.broadcast %cst_24 : f32 to vector<1x8x8xf32>
    %61 = arith.select %59, %3, %60 : vector<1x8x8xi1>, vector<1x8x8xf32>
    %cst_25 = arith.constant dense<0xFF800000> : vector<1x8xf32>
    %62 = vector.multi_reduction <maximumf>, %61, %cst_25 [2] : vector<1x8x8xf32> to vector<1x8xf32>
    %63 = vector.shape_cast %62 : vector<1x8xf32> to vector<1x8x1xf32>
    %64 = arith.cmpf oge, %55, %63 : vector<1x8x1xf32>
    %65 = arith.andi %64, %14 : vector<1x8x1xi1>
    %c0_26 = arith.constant 0 : index
    %c0_27 = arith.constant 0 : index
    %c0_28 = arith.constant 0 : index
    %66 = vector.load %arg7[%c0_26, %c0_27, %c0_28] : memref<1x8x1xf32, #tpu.memory_space<vmem>>, vector<1x8x1xf32>
    %67 = arith.extui %65 : vector<1x8x1xi1> to vector<1x8x1xi32>
    %68 = arith.sitofp %67 : vector<1x8x1xi32> to vector<1x8x1xf32>
    %69 = arith.addf %66, %68 : vector<1x8x1xf32>
    %c0_29 = arith.constant 0 : index
    %c0_30 = arith.constant 0 : index
    %c0_31 = arith.constant 0 : index
    %70 = vector.load %arg7[%c0_29, %c0_30, %c0_31] : memref<1x8x1xf32, #tpu.memory_space<vmem>>, vector<1x8x1xf32>
    tpu.vector_store %arg7[%c0_29, %c0_30, %c0_31], %69 {strides = array<i32>} : memref<1x8x1xf32, #tpu.memory_space<vmem>>, vector<1x8x1xf32>,
    %c2_i32 = arith.constant 2 : i32
    %71 = arith.cmpi eq, %arg1, %c2_i32 : i32
    %72 = arith.extui %71 : i1 to i32
    %c0_i32_32 = arith.constant 0 : i32
    %73 = arith.cmpi ne, %72, %c0_i32_32 : i32
    scf.if %73 {
      %c0_33 = arith.constant 0 : index
      %c0_34 = arith.constant 0 : index
      %c0_35 = arith.constant 0 : index
      %74 = vector.load %arg6[%c0_33, %c0_34, %c0_35] : memref<1x8x8xf32, #tpu.memory_space<vmem>>, vector<1x8x8xf32>
      %75 = vector.shape_cast %74 : vector<1x8x8xf32> to vector<1x1x8x8xf32>
      %cst_36 = arith.constant dense<0.000000e+00> : vector<1xf32>
      %76 = vector.multi_reduction <add>, %75, %cst_36 [1, 2, 3] : vector<1x1x8x8xf32> to vector<1xf32>
      %77 = vector.shape_cast %76 : vector<1xf32> to vector<1x1x1x1xf32>
      %78 = vector.extract %77[0, 0, 0, 0] : f32 from vector<1x1x1x1xf32>
      %79 = vector.broadcast %78 : f32 to vector<1x1x1xf32>
      %c0_37 = arith.constant 0 : index
      %c0_38 = arith.constant 0 : index
      %c0_39 = arith.constant 0 : index
      %80 = vector.load %arg4[%c0_37, %c0_38, %c0_39] : memref<1x1x1xf32, #tpu.memory_space<vmem>>, vector<1x1x1xf32>
      tpu.vector_store %arg4[%c0_37, %c0_38, %c0_39], %79 {strides = array<i32>} : memref<1x1x1xf32, #tpu.memory_space<vmem>>, vector<1x1x1xf32>,
      %c0_40 = arith.constant 0 : index
      %c0_41 = arith.constant 0 : index
      %c0_42 = arith.constant 0 : index
      %81 = vector.load %arg7[%c0_40, %c0_41, %c0_42] : memref<1x8x1xf32, #tpu.memory_space<vmem>>, vector<1x8x1xf32>
      %82 = vector.shape_cast %81 : vector<1x8x1xf32> to vector<1x1x8x1xf32>
      %cst_43 = arith.constant dense<0.000000e+00> : vector<1xf32>
      %83 = vector.multi_reduction <add>, %82, %cst_43 [1, 2, 3] : vector<1x1x8x1xf32> to vector<1xf32>
      %84 = vector.shape_cast %83 : vector<1xf32> to vector<1x1x1x1xf32>
      %85 = vector.extract %84[0, 0, 0, 0] : f32 from vector<1x1x1x1xf32>
      %86 = vector.broadcast %85 : f32 to vector<1x1x1xf32>
      %c0_44 = arith.constant 0 : index
      %c0_45 = arith.constant 0 : index
      %c0_46 = arith.constant 0 : index
      %87 = vector.load %arg5[%c0_44, %c0_45, %c0_46] : memref<1x1x1xf32, #tpu.memory_space<vmem>>, vector<1x1x1xf32>
      tpu.vector_store %arg5[%c0_44, %c0_45, %c0_46], %86 {strides = array<i32>} : memref<1x1x1xf32, #tpu.memory_space<vmem>>, vector<1x1x1xf32>,
    } else {
    }
    return
  }
  func.func @transform_0(%arg0: i32, %arg1: i32) -> (i32, i32, i32) {
    %c0_i32 = arith.constant 0 : i32
    %c0_i32_0 = arith.constant 0 : i32
    return %arg0, %arg1, %c0_i32 : i32, i32, i32
  }
  func.func @transform_1(%arg0: i32, %arg1: i32) -> (i32, i32, i32) {
    %c0_i32 = arith.constant 0 : i32
    %c0_i32_0 = arith.constant 0 : i32
    return %arg0, %arg1, %c0_i32 : i32, i32, i32
  }
  func.func @transform_2(%arg0: i32, %arg1: i32) -> (i32, i32, i32) {
    %c0_i32 = arith.constant 0 : i32
    %c0_i32_0 = arith.constant 0 : i32
    %c0_i32_1 = arith.constant 0 : i32
    return %arg0, %c0_i32, %c0_i32_0 : i32, i32, i32
  }
  func.func @transform_3(%arg0: i32, %arg1: i32) -> (i32, i32, i32) {
    %c0_i32 = arith.constant 0 : i32
    %c0_i32_0 = arith.constant 0 : i32
    %c0_i32_1 = arith.constant 0 : i32
    return %arg0, %c0_i32, %c0_i32_0 : i32, i32, i32
  }
}

</mosaic_0001>

<bundles_post_ra>
// kernel: tpu_custom_call.1
= control target key start
LH: loop header
LB: loop body
LE: loop exit
PB: predicated region body
PF: predicated region fallthrough
CT: control target
= control target key end

     0   :  { %s573_s12 = smov 0   ;;  %s575_s13 = smov 0   ;;  %s656_s0 = inlined_call_operand.vmem [shape: f32[2,20,8], index: 0, kind: input, shape index: {}]   ;;  %s657_s1 = inlined_call_operand.vmem [shape: s32[2,20,1], index: 1, kind: input, shape index: {}]   ;;  %s658_s2 = inlined_call_operand.vmem [shape: f32[2,1,1], index: 2, kind: output, shape index: {0}]   ;;  %s659_s3 = inlined_call_operand.vmem [shape: f32[2,1,1], index: 3, kind: output, shape index: {1}]  }
   0x1   :  { %s577_s14 = smov 0   ;;  %s579_s15 = smov 0  }
   0x2   :  { %s581_s16 = smov 0  }
   0x3 LB: > { %s23_s17 = sadd.s32 1, %s538_s14  ;;  %s26_s18 = sadd.s32 1, %s542_s15  ;;  %s546_s16 = sphi %s581_s16, %s14_s16   ;;  %s542_s15 = sphi %s579_s15, %s663_s15   ;;  %s538_s14 = sphi %s577_s14, %s662_s14   ;;  %s534_s13 = sphi %s575_s13, %s661_s13   ;;  %s530_s12 = sphi %s573_s12, %s660_s12  }
   0x4   : > { %p24_p0 = scmp.ge.s32.totalorder %s23_s17, 3  ;;  %p442_p1 = scmp.ge.s32.totalorder %s546_s16, 1 }
   0x5   : > { %p172_p2 = scmp.lt.s32.totalorder %s546_s16, 7 }
   0x6   : > { %s665_s17 = smov (%p24_p0, %s23_s17), 0  ;;  %s667_s18 = smov (!%p24_p0, %s26_s18), %s542_s15 }
   0x7   : > { %p173_p3 = pnand %p442_p1, %p172_p2  ;;  %p28_p4 = scmp.ge.s32.totalorder %s667_s18, 2 }
   0x8   : > { %p208_p5 = scmp.lt.s32.totalorder (!%p173_p3), %s534_s13, 1  ;;  %p210_p6 = scmp.lt.s32.totalorder (!%p173_p3), %s530_s12, 2 }
   0x9   : > { %s669_s18 = smov (%p28_p4, %s667_s18), 0  ;;  %176 = sbr.rel (%p173_p3) target bundleno = 418 (0x1a2), region = 28 }
   0xa   : > { %p445_p7 = scmp.ne.s32.totalorder (!%p173_p3), %s530_s12, 0 }
  0x10   : > { %s671_s13 = smov (!%p208_p5, %s534_s13), 1  ;;  %233 = sbr.rel (%p445_p7) target bundleno = 23 (0x17), region = 32 }
  0x11   : > { %s211_s19 = scalar_select %p210_p6, %s530_s12, 2 }
  0x12   : > { %s451_s20 = smul.u32 3, %s671_s13  ;;  %s226_s23 = scalar_lea.vmem %s658_s2, %s671_s13  ;;  %vm234_vm0 = vcmask (!%p445_p7), 64512   ;;  %vm236_vm1 = vcmask (!%p445_p7), 7168   ;;  %v548_v0 = vmov (!%p445_p7), 0.0  }
  0x13   : > { %s229_s26 = scalar_lea.vmem %s659_s3, %s671_s13  ;;  %235 = vst.msk [vmem:[#allocation2] sm:$0xff] (!%p445_p7), %vm234_vm0, %v548_v0 }
  0x14   : > { %s213_s27 = sadd.s32 %s451_s20, %s211_s19  ;;  %237 = vst.msk [vmem:[#allocation3] sm:$0xff] (!%p445_p7), %vm236_vm1, %v548_v0 }
  0x15   : > { %s443_s28 = sshll.u32 %s213_s27, 3 }
  0x16   : > { %s215_s4 = scalar_lea.vmem %s656_s0, %s443_s28  ;;  %s223_s7 = scalar_lea.vmem %s657_s1, %s443_s28 }
  0x17 PF: > { %v239_v1 = vld [vmem:[%s223_s7] sm:$0xff]  ;;  %v240_v2 = vlaneseq  ;;  %v549_v3 = vmov 0   ;;  %vm276_vm2 = vcmask 64512   ;;  %s446_s8 = sshll.u32 %s530_s12, 3  ;;  %vm550_vm8 = vmmov 1   ;;  %p448_p8 = scmp.ne.s32.totalorder %s530_s12, 2 }
  0x18   : > { %501 = vset.pattern.permute.xlu0 %v549_v3  ;;  %v238_v4 = vld [vmem:[%s215_s4] sm:$0xff]  ;;  %v249_v19 = vstv %s446_s8  ;;  %v551_v26 = vmov 0.75   ;;  %vm298_vm13 = vcmask 7168   ;;  %v552_v37 = vmov 0.0  }
  0x19   : > { %243 = vperm.xlu0 %501, %v239_v1   ;;  %v241_v5 = vand.u32 127, %v240_v2  ;;  %v252_v10 = vand.u32 2147483647, %v238_v4  ;;  %vm260_vm5 = vcmp.ge.f32.partialorder %v238_v4, 0.0  ;;  %v247_v17 = vshrl.u32 %v240_v2, 7 }
  0x1a   : > { %v274_v31 = vld [vmem:[#allocation2] sm:$0xff]  ;;  %vm316_vm14 = vcmask (!%p448_p8), 0  }
  0x1b   : > { %vm285_vm3 = vcmp.eq.s32.totalorder %v241_v5, 7  ;;  %vm278_vm4 = vcmp.lt.s32.totalorder %v241_v5, 7  ;;  %v253_v11 = vsub.f32 0.0, %v252_v10  ;;  %v250_v23 = vadd.s32 %v249_v19, %v247_v17  ;;  %v294_v36 = vld [vmem:[#allocation3] sm:$0xff] }
  0x1c   : > { %v288_v6 = vsel %vm285_vm3, %v238_v4, -3.4028235e+38  ;;  %v281_v8 = vsel %vm278_vm4, %v238_v4, -3.4028235e+38 }
  0x1d   : > { %v289_v7 = vsel %vm276_vm2, %v288_v6, -inf  ;;  %v282_v9 = vsel %vm276_vm2, %v281_v8, -inf  ;;  %v254_v12 = vmul.f32 1.442695, %v253_v11  ;;  %vm251_vm10 = vcmp.lt.s32.totalorder %v250_v23, 20 }
  0x1e   : > { %290 = vmax.xlane.f32.xlu1 %v289_v7 }
  0x1f   : > { %502 = vpow2.f32 %v254_v12 }
  0x29   : > { %v503_v13 = vpop.eup %502 }
  0x2a   : > { %v256_v14 = vadd.f32 1.0, %v503_v13 }
  0x2c   : > { %504 = vlog2.f32 %v256_v14 }
  0x2d   : > { %506 = vrcp.f32 %v256_v14 }
  0x36   : > { %v505_v15 = vpop.eup %504 }
  0x37   : > { %v258_v18 = vmul.f32 0.6931472, %v505_v15  ;;  %v507_v20 = vpop.eup %506 }
  0x38   : > { %283 = vmax.xlane.f32.xlu0 %v282_v9 }
  0x98   : > { %v244_v16 = vpop.permute.xlu0 %243 }
  0x99   : > { %vm245_vm6 = vcmp.eq.s32.totalorder %v241_v5, %v244_v16 }
  0x9a   : > { %vm261_vm7 = vmxor %vm245_vm6, %vm260_vm5  ;;  %v267_v27 = vsel %vm245_vm6, 0.25, %v551_v26 }
  0x9b   : > { %vm262_vm9 = vmxor %vm261_vm7, %vm550_vm8 }
  0x9c   : > { %v263_v21 = vsel %vm262_vm9, 0.0, %v252_v10  ;;  %v265_v22 = vsel %vm262_vm9, %v503_v13, 1.0 }
  0x9d   : > { %v264_v24 = vadd.f32 %v263_v21, %v258_v18  ;;  %v266_v25 = vmul.f32 %v507_v20, %v265_v22 }
  0x9f   : > { %v268_v28 = vmul.f32 %v267_v27, %v264_v24  ;;  %v269_v29 = vmul.f32 %v266_v25, %v266_v25 }
  0xa1   : > { %v270_v30 = vmul.f32 %v269_v29, %v268_v28 }
  0xa3   : > { %v273_v32 = vsel %vm251_vm10, %v270_v30, 0.0 }
  0xa4   : > { %v275_v33 = vadd.f32 %v274_v31, %v273_v32 }
  0xa6   : > { %277 = vst.msk [vmem:[#allocation2] sm:$0xff] %vm276_vm2, %v275_v33 }
  0xab   : > { %v291_v34 = vpop.xlane.xlu1 %290 }
  0xad   : > { %v304_v40 = vld [vmem:[#allocation2] sm:$0xff] (!%p448_p8) }
  0xae   : > { %v305_v42 = vsel (!%p448_p8), %vm276_vm2, %v304_v40, 0.0 }
  0xaf   : > { %306 = vadd.xlane.f32.xlu0 (!%p448_p8), %v305_v42 }
  0xc5   : > { %v284_v35 = vpop.xlane.xlu0 %283  ;;  %303 = sbr.rel (%p448_p8) target bundleno = 418 (0x1a2), region = 36 }
  0xc6   : > { %vm292_vm11 = vcmp.ge.f32.partialorder %v284_v35, %v291_v34 }
  0xc7   : > { %vm293_vm12 = vmand %vm292_vm11, %vm251_vm10 }
  0xc8   : > { %v447_v38 = vsel %vm293_vm12, 1.0, %v552_v37 }
  0xc9   : > { %v297_v39 = vadd.f32 %v447_v38, %v294_v36 }
  0xcb   : > { %299 = vst.msk [vmem:[#allocation3] sm:$0xff] %vm298_vm13, %v297_v39 }
  0xd2   : > { %v318_v41 = vld [vmem:[#allocation3] sm:$0xff] }
  0xd3   : > { %v319_v43 = vsel %vm298_vm13, %v318_v41, 0.0 }
  0xd4   : > { %320 = vadd.xlane.f32.xlu0 %v319_v43 }
 0x13c   : > { %v307_v44 = vpop.xlane.xlu0 %306 }
 0x13d   : > { %v308_v45 = vrot.slane %v307_v44, 4 }
 0x13f   : > { %v309_v46 = vadd.f32 %v308_v45, %v307_v44 }
 0x141   : > { %v310_v48 = vrot.slane %v309_v46, 2 }
 0x143   : > { %v311_v51 = vadd.f32 %v310_v48, %v309_v46 }
 0x145   : > { %v312_v53 = vrot.slane %v311_v51, 1 }
 0x147   : > { %v313_v55 = vadd.f32 %v312_v53, %v311_v51 }
 0x149   : > { %452 = vpush %v313_v55 }
 0x161   : > { %v321_v47 = vpop.xlane.xlu0 %320 }
 0x162   : > { %v322_v49 = vrot.slane %v321_v47, 4 }
 0x164   : > { %v323_v50 = vadd.f32 %v322_v49, %v321_v47 }
 0x166   : > { %v324_v52 = vrot.slane %v323_v50, 2 }
 0x168   : > { %v325_v54 = vadd.f32 %v324_v52, %v323_v50 }
 0x16a   : > { %v326_v56 = vrot.slane %v325_v54, 1 }
 0x16c   : > { %v327_v57 = vadd.f32 %v326_v56, %v325_v54 }
 0x16e   : > { %454 = vpush %v327_v57 }
 0x17a   : > { %s453_s9 = spop %452 }
 0x17b   : > { %v315_v58 = vstv %s453_s9 }
 0x17c   : > { %317 = vst.msk [vmem:[%s226_s23] sm:$0x1] %vm316_vm14, %v315_v58 }
 0x19f   : > { %s455_s12 = spop %454 }
 0x1a0   : > { %v329_v59 = vstv %s455_s12 }
 0x1a1   : > { %330 = vst.msk [vmem:[%s229_s26] sm:$0x1] %vm316_vm14, %v329_v59 }
 0x1a2 PF: > { %s14_s16 = sadd.s32 1, %s546_s16   ;;  %s660_s12 = smov %s538_s14 }
 0x1a3   : > { %p11_p9 = scmp.ge.s32.totalorder %s14_s16, 8   ;;  %s661_s13 = smov %s542_s15 }
 0x1a4   : > { %s662_s14 = smov %s665_s17  ;;  %s663_s15 = smov %s669_s18 }
 0x1a5   :  { %13 = sbr.rel (!%p11_p9) target bundleno = 3 (0x3), region = 81 }

</bundles_post_ra>
